<compile_context>
chip_gen: v5e
topology: v5e:2x2
jax: 0.10.0
libtpu: 0.0.40
codegen_flags: <defaults>
</compile_context>

<pallas_src>
import jax
import jax.numpy as jnp
from jax.experimental import pallas as pl
from jax.experimental.pallas import tpu as pltpu


def _sac_soft_value_kernel(log_alpha_ref, q_ref, logp_ref, v_ref):
    """v = q - exp(log_alpha) * logp, with log_alpha a scalar living in SMEM.

    This is the "fuse exp(log_alpha) into the consuming SAC kernel" pattern:
    the scalar is read from SMEM, broadcast to the tile, and the exp runs on
    the EUP slot (never the saturated slot here), so it costs nothing extra
    relative to the VPU subtract/multiply that the consumer needs anyway.
    """
    la = log_alpha_ref[0]                                   # scalar SMEM read
    alpha = jnp.exp(jnp.full(q_ref.shape, la, jnp.float32))  # broadcast + EUP exp
    v_ref[...] = q_ref[...] - alpha * logp_ref[...]


def sac_soft_value(log_alpha: jax.Array, q: jax.Array, logp: jax.Array) -> jax.Array:
    """Pallas call: grid-less, full-array specs; log_alpha in SMEM, tensors in VMEM."""
    return pl.pallas_call(
        _sac_soft_value_kernel,
        out_shape=jax.ShapeDtypeStruct(q.shape, jnp.float32),
        in_specs=[
            pl.BlockSpec(memory_space=pltpu.MemorySpace.SMEM),   # log_alpha (1,)
            pl.BlockSpec(memory_space=pltpu.MemorySpace.VMEM),   # q
            pl.BlockSpec(memory_space=pltpu.MemorySpace.VMEM),   # logp
        ],
        out_specs=pl.BlockSpec(memory_space=pltpu.MemorySpace.VMEM),
    )(log_alpha, q, logp)


class LogAlpha:
    """JAX port of the PyTorch LogAlpha module."""

    def __init__(self) -> None:
        # Deterministic init, matching nn.Parameter(torch.tensor([0.0])).
        # TODO(synk): in a real trainer this belongs in a pytree param struct
        # so the optimizer can functionally replace it.
        self.value = jnp.array([0.0], dtype=jnp.float32)

    def forward(self):
        # PyTorch forward() is `return` -> None.  No compute to kernelize.
        return

    def log_alpha(self) -> jax.Array:
        # Raw parameter read: no kernel, no DMA round trip.
        return self.value

    def alpha(self) -> jax.Array:
        # Plain jnp.exp: fuses into the surrounding jitted step for ~zero cost
        # and is differentiable (no custom_vjp needed), per the perf review.
        return jnp.exp(self.value)

    def soft_value(self, q: jax.Array, logp: jax.Array) -> jax.Array:
        # Demonstrates the recommended fusion: exp(log_alpha) computed inside
        # the downstream SAC consumer kernel with log_alpha as an SMEM scalar.
        return sac_soft_value(self.value, q, logp)


if __name__ == "__main__":
    key = jax.random.PRNGKey(0)
    kq, kl = jax.random.split(key)

    # Small, lane-dense SAC-style inputs: one vreg (8 x 128) of Q-values and
    # log-probs.
    q = jax.random.normal(kq, (8, 128), dtype=jnp.float32)
    logp = -jnp.abs(jax.random.normal(kl, (8, 128), dtype=jnp.float32))

    model = LogAlpha()

    # forward() semantics: returns None, exactly as in PyTorch.
    assert model.forward() is None

    # Raw parameter read.
    v = model.log_alpha()
    assert v.shape == (1,) and v.dtype == jnp.float32
    assert float(v[0]) == 0.0

    # alpha = exp(0) = 1 via plain (fuseable, differentiable) jnp.exp.
    a = model.alpha()
    assert a.shape == (1,) and abs(float(a[0]) - 1.0) < 1e-6

    # Fused Pallas path: v = q - exp(log_alpha) * logp.
    out = jax.block_until_ready(model.soft_value(q, logp))
    ref = q - jnp.exp(model.value[0]) * logp
    assert out.shape == (8, 128) and out.dtype == jnp.float32
    assert bool(jnp.allclose(out, ref, atol=1e-6, rtol=1e-6))

    print("KERNEL_OK")
</pallas_src>

<mosaic_0001>
module attributes {stable_mosaic.version = 11 : i64} {
  func.func @_sac_soft_value_kernel(%arg0: memref<1xf32, #tpu.memory_space<smem>>, %arg1: memref<8x128xf32, #tpu.memory_space<vmem>>, %arg2: memref<8x128xf32, #tpu.memory_space<vmem>>, %arg3: memref<8x128xf32, #tpu.memory_space<vmem>>) attributes {dimension_semantics = [], scalar_prefetch = 0 : i64, scratch_operands = 0 : i64, tpu.core_type = #tpu.core_type<tc>} {
    %c0 = arith.constant 0 : index
    %0 = memref.load %arg0[%c0] : memref<1xf32, #tpu.memory_space<smem>>
    %1 = vector.broadcast %0 : f32 to vector<8x128xf32>
    %2 = math.exp %1 : vector<8x128xf32>
    %c0_0 = arith.constant 0 : index
    %c0_1 = arith.constant 0 : index
    %3 = vector.load %arg1[%c0_0, %c0_1] : memref<8x128xf32, #tpu.memory_space<vmem>>, vector<8x128xf32>
    %c0_2 = arith.constant 0 : index
    %c0_3 = arith.constant 0 : index
    %4 = vector.load %arg2[%c0_2, %c0_3] : memref<8x128xf32, #tpu.memory_space<vmem>>, vector<8x128xf32>
    %5 = arith.mulf %2, %4 : vector<8x128xf32>
    %6 = arith.subf %3, %5 : vector<8x128xf32>
    %c0_4 = arith.constant 0 : index
    %c0_5 = arith.constant 0 : index
    %7 = vector.load %arg3[%c0_4, %c0_5] : memref<8x128xf32, #tpu.memory_space<vmem>>, vector<8x128xf32>
    tpu.vector_store %arg3[%c0_4, %c0_5], %6 {strides = array<i32>} : memref<8x128xf32, #tpu.memory_space<vmem>>, vector<8x128xf32>,
    return
  }
}

</mosaic_0001>

<bundles_post_ra>
// kernel: tpu_custom_call.1
= control target key start
LH: loop header
LB: loop body
LE: loop exit
PB: predicated region body
PF: predicated region fallthrough
CT: control target
= control target key end

     0   :  { %9 = vsyncpa [#allocation4], 0  ;;  %s189_s0 = inlined_call_operand.<no memory space> [shape: f32[1], index: 0, kind: input, shape index: {}]   ;;  %s190_s1 = inlined_call_operand.hbm [shape: f32[8,128], index: 1, kind: input, shape index: {}]   ;;  %s191_s2 = inlined_call_operand.hbm [shape: f32[8,128], index: 2, kind: input, shape index: {}]   ;;  %s192_s3 = inlined_call_operand.hbm [shape: f32[8,128], index: 3, kind: output, shape index: {}]  }
   0x1   :  { %10 = vsyncpa [#allocation7], 0 }
   0x2   :  { %11 = vsyncpa [#allocation5], 0  ;;  %s19_s14 = sshll.u32 %s190_s1, 4  ;;  %s154_s15 = smov [#allocation3]   ;;  %s20_s14 = int_to_ptr.hbm [resolvable:$true] %s19_s14 }
   0x3   :  { %s21_s16 = sshll.u32 %s154_s15, 4  ;;  %s30_s19 = sshll.u32 %s191_s2, 4  ;;  %s22_s16 = int_to_ptr.vmem [resolvable:$true] %s21_s16  ;;  %s31_s19 = int_to_ptr.hbm [resolvable:$true] %s30_s19 }
   0x4   :  { %24 = dma.hbm_to_vmem [thread:$0]  %s20_s14, 128, %s22_s16, [#allocation4]  }
   0x5   :  { %s155_s20 = smov [#allocation6]  }
   0x6   :  { %s32_s21 = sshll.u32 %s155_s20, 4  ;;  %s33_s21 = int_to_ptr.vmem [resolvable:$true] %s32_s21 }
   0x7   :  { %35 = dma.hbm_to_vmem [thread:$0]  %s31_s19, 128, %s33_s21, [#allocation7]  }
   0x8   :  { %148 = dma.done.wait [#allocation4], 128  }
   0x9   :  { %149 = vsyncadd [#allocation4], 4294967168 }
   0xa   :  { %150 = dma.done.wait [#allocation7], 128  }
   0xb   :  { %151 = vsyncadd [#allocation7], 4294967168  ;;  %v45_v0 = vstv %s189_s0  ;;  %v49_v2 = vld [vmem:[#allocation6] sm:$0xff]  ;;  %v48_v4 = vld [vmem:[#allocation3] sm:$0xff]  ;;  %s156_s2 = smov [#allocation8]   ;;  %s60_s26 = sshll.u32 %s192_s3, 4  ;;  %s61_s26 = int_to_ptr.hbm [resolvable:$true] %s60_s26 }
   0xc   :  { %v46_v1 = vmul.f32 1.442695, %v45_v0  ;;  %s58_s23 = sshll.u32 %s156_s2, 4  ;;  %s59_s23 = int_to_ptr.vmem [resolvable:$true] %s58_s23 }
   0xe   :  { %74 = vpow2.f32 %v46_v1 }
  0x14   :  { %v75_v3 = vpop.eup %74 }
  0x15   :  { %v50_v5 = vmul.f32 %v75_v3, %v49_v2 }
  0x17   :  { %v51_v6 = vsub.f32 %v48_v4, %v50_v5 }
  0x19   :  { %52 = vst [vmem:[#allocation8] sm:$0xff] %v51_v6 }
  0x1a   :  { %63 = dma.vmem_to_hbm [thread:$0]  %s59_s23, 128, %s61_s26, [#allocation5]  }
  0x1b   :  { %152 = dma.done.wait [#allocation5], 128  }
  0x1c   :  { %153 = vsyncadd [#allocation5], 4294967168 }
  0x1d   :  { %68 = vsyncpa [#allocation4], 1 }
  0x1e   :  { %69 = vsyncpa [#allocation7], 1 }
  0x1f   :  { %70 = vsyncpa [#allocation5], 1 }

</bundles_post_ra>
